<compile_context>
chip_gen: v7x
topology: tpu7x:2x2x1
jax: 0.10.0
libtpu: 0.0.40
codegen_flags: <defaults>
</compile_context>

<pallas_src>
import math
from functools import partial

import jax
import jax.numpy as jnp
from jax import lax
from jax.experimental import pallas as pl
from jax.experimental.pallas import tpu as pltpu

_INV_SQRT2 = 1.0 / math.sqrt(2.0)

# VMEM budget used both to choose between the resident-weights kernel and the
# hidden-axis-tiled kernel, and to size vmem_limit_bytes. Conservative w.r.t. the
# smallest relevant per-TC VMEM (v7x: 64 MiB physical, 32 MiB scoped default).
_VMEM_BUDGET = 40 << 20
_VMEM_CAP = 64 << 20


def _round_up(v, k):
    return (v + k - 1) // k * k


def _gelu_exact(h):
    # exact erf-GELU, matching transformers' get_activation('gelu'); f32 epilogue.
    return 0.5 * h * (1.0 + lax.erf(h * _INV_SQRT2))


# -------------------------------------------------------------------------------------
# Kernels
# -------------------------------------------------------------------------------------
def _ner_kernel_resident(x_ref, w1_ref, b1_ref, w2_ref, b2_ref, o_ref):
    # x_ref : (tm, dim)            row tile of the flattened input
    # w1_ref: (dim, hidden_pad)    dense weight (full, resident, single-buffered)
    # b1_ref: (1, hidden_pad)      dense bias (f32)
    # w2_ref: (hidden_pad, n_pad)  out_proj weight (full, resident, single-buffered)
    # b2_ref: (1, n_pad)           out_proj bias (f32)
    # o_ref : (tm, n_pad)          lane-dense logits tile
    x = x_ref[...]  # native dtype (bf16 stays bf16 -> native MXU pass)
    h = jnp.dot(x, w1_ref[...], preferred_element_type=jnp.float32)
    h = _gelu_exact(h + b1_ref[...])
    out = jnp.dot(h.astype(w2_ref.dtype), w2_ref[...],
                  preferred_element_type=jnp.float32)
    o_ref[...] = (out + b2_ref[...]).astype(o_ref.dtype)


def _ner_kernel_ktiled(x_ref, w1_ref, b1_ref, w2_ref, b2_ref, o_ref, acc_ref):
    # Hidden axis (2*dim) tiled as the last ("arbitrary") grid axis; accumulate the
    # second matmul into an f32 VMEM scratch, add bias + write back on the last k step.
    k = pl.program_id(1)

    @pl.when(k == 0)
    def _():
        acc_ref[...] = jnp.zeros_like(acc_ref)

    x = x_ref[...]
    h = jnp.dot(x, w1_ref[...], preferred_element_type=jnp.float32)
    h = _gelu_exact(h + b1_ref[...])  # elementwise over hidden -> exact per tile
    acc_ref[...] += jnp.dot(h.astype(w2_ref.dtype), w2_ref[...],
                            preferred_element_type=jnp.float32)

    @pl.when(k == pl.num_programs(1) - 1)
    def _():
        o_ref[...] = (acc_ref[...] + b2_ref[...]).astype(o_ref.dtype)


# -------------------------------------------------------------------------------------
# Wrapper
# -------------------------------------------------------------------------------------
@partial(jax.jit,
         static_argnames=("tm", "max_hidden_tile", "out_dtype", "cast_operands_to_bf16"))
def reformer_ner_forward(x, w1, b1, w2, b2, *, tm=512, max_hidden_tile=None,
                         out_dtype=None, cast_operands_to_bf16=False):
    """x: [batch, seq, dim] -> logits [batch, seq, num_labels].

    Weights are stored [in_features, out_features] (transpose of PyTorch Linear).
    """
    batch, seq, dim = x.shape
    hidden = w1.shape[1]          # 2 * dim
    num_labels = w2.shape[1]
    m = batch * seq

    x2d = x.reshape(m, dim)

    # Opt-in bf16 MXU fast path when inputs arrive as f32 (numerics change slightly).
    if cast_operands_to_bf16 and x2d.dtype == jnp.float32:
        x2d = x2d.astype(jnp.bfloat16)
        w1 = w1.astype(jnp.bfloat16)
        w2 = w2.astype(jnp.bfloat16)

    out_dt = out_dtype if out_dtype is not None else x.dtype

    # ---- row tiling ------------------------------------------------------------------
    pack = 16 if x2d.dtype.itemsize == 2 else 8   # bf16 sublane packing is 16
    tm_eff = min(tm, _round_up(m, pack))
    # Guarantee >=2 row tiles whenever M allows, so the "parallel" axis can shard across
    # v7x's two TensorCores (harmless extra sequential step on v5e/v6e).
    if m <= tm_eff and m >= 2 * pack:
        tm_eff = _round_up(-(-m // 2), pack)
    m_pad = _round_up(m, tm_eff)
    if m_pad != m:
        x2d = jnp.pad(x2d, ((0, m_pad - m), (0, 0)))

    # ---- lane-pad hidden (2*dim) and num_labels to multiples of 128 -------------------
    hidden_pad = _round_up(max(hidden, 128), 128)
    n_pad = _round_up(max(num_labels, 128), 128)
    if hidden_pad != hidden:
        w1 = jnp.pad(w1, ((0, 0), (0, hidden_pad - hidden)))
        b1 = jnp.pad(b1, ((0, hidden_pad - hidden),))
        w2 = jnp.pad(w2, ((0, hidden_pad - hidden), (0, 0)))
    if n_pad != num_labels:
        w2 = jnp.pad(w2, ((0, 0), (0, n_pad - num_labels)))
        b2 = jnp.pad(b2, ((0, n_pad - num_labels),))

    # Biases enter the kernel already f32 (no per-step VALU cast in the epilogue).
    b1_f32 = b1.astype(jnp.float32).reshape(1, hidden_pad)
    b2_f32 = b2.astype(jnp.float32).reshape(1, n_pad)

    x_bytes = x2d.dtype.itemsize
    w_bytes = w1.dtype.itemsize
    o_bytes = jnp.dtype(out_dt).itemsize

    def footprint(th, k_tiled):
        wbuf = 2 if k_tiled else 1                       # Buffered(1) when resident
        tot = 2 * tm_eff * dim * x_bytes                 # x tile (double buffered)
        tot += wbuf * dim * th * w_bytes                 # W1
        tot += wbuf * th * 4                             # b1 (f32)
        tot += wbuf * th * n_pad * w_bytes               # W2
        tot += 1 * n_pad * 4                             # b2 (f32, Buffered(1))
        tot += 2 * tm_eff * n_pad * o_bytes              # out tile (double buffered)
        tot += tm_eff * th * 4 + tm_eff * th * w_bytes   # h (f32) + cast copy
        if k_tiled:
            tot += tm_eff * n_pad * 4                    # f32 accumulator scratch
        return tot

    resident_bytes = footprint(hidden_pad, k_tiled=False)
    use_resident = (resident_bytes <= _VMEM_BUDGET) and (max_hidden_tile is None)

    if use_resident:
        th = hidden_pad
        vmem_need = resident_bytes
    else:
        # Hidden-tile candidates: multiples of 128 dividing hidden_pad, largest first.
        cands = [c for c in range(hidden_pad, 127, -128) if hidden_pad % c == 0]
        if max_hidden_tile is not None:
            cands = [c for c in cands if c <= max_hidden_tile] or [128]
        th = cands[-1]
        for c in cands:
            if footprint(c, k_tiled=True) <= _VMEM_BUDGET:
                th = c
                break
        vmem_need = footprint(th, k_tiled=True)

    vmem_limit = int(min(max(vmem_need * 5 // 4 + (2 << 20), 8 << 20), _VMEM_CAP))

    if use_resident:
        grid = (m_pad // tm_eff,)
        out2d = pl.pallas_call(
            _ner_kernel_resident,
            out_shape=jax.ShapeDtypeStruct((m_pad, n_pad), out_dt),
            grid_spec=pltpu.PrefetchScalarGridSpec(
                num_scalar_prefetch=0,
                grid=grid,
                in_specs=[
                    pl.BlockSpec((tm_eff, dim), lambda i: (i, 0)),          # x row tile
                    pl.BlockSpec((dim, hidden_pad), lambda i: (0, 0),       # W1 resident
                                 pipeline_mode=pl.Buffered(1)),
                    pl.BlockSpec((1, hidden_pad), lambda i: (0, 0),         # b1
                                 pipeline_mode=pl.Buffered(1)),
                    pl.BlockSpec((hidden_pad, n_pad), lambda i: (0, 0),     # W2 resident
                                 pipeline_mode=pl.Buffered(1)),
                    pl.BlockSpec((1, n_pad), lambda i: (0, 0),              # b2
                                 pipeline_mode=pl.Buffered(1)),
                ],
                out_specs=pl.BlockSpec((tm_eff, n_pad), lambda i: (i, 0)),
            ),
            compiler_params=pltpu.CompilerParams(
                dimension_semantics=("parallel",),
                vmem_limit_bytes=vmem_limit),
        )(x2d, w1, b1_f32, w2, b2_f32)
    else:
        grid = (m_pad // tm_eff, hidden_pad // th)
        out2d = pl.pallas_call(
            _ner_kernel_ktiled,
            out_shape=jax.ShapeDtypeStruct((m_pad, n_pad), out_dt),
            grid_spec=pltpu.PrefetchScalarGridSpec(
                num_scalar_prefetch=0,
                grid=grid,
                in_specs=[
                    pl.BlockSpec((tm_eff, dim), lambda i, k: (i, 0)),       # x row tile
                    pl.BlockSpec((dim, th), lambda i, k: (0, k)),           # W1 k-tile
                    pl.BlockSpec((1, th), lambda i, k: (0, k)),             # b1 k-tile
                    pl.BlockSpec((th, n_pad), lambda i, k: (k, 0)),         # W2 k-tile
                    pl.BlockSpec((1, n_pad), lambda i, k: (0, 0),           # b2 (constant)
                                 pipeline_mode=pl.Buffered(1)),
                ],
                out_specs=pl.BlockSpec((tm_eff, n_pad), lambda i, k: (i, 0)),
                scratch_shapes=[pltpu.VMEM((tm_eff, n_pad), jnp.float32)],
            ),
            compiler_params=pltpu.CompilerParams(
                dimension_semantics=("parallel", "arbitrary"),
                vmem_limit_bytes=vmem_limit),
        )(x2d, w1, b1_f32, w2, b2_f32)

    # Strip row and lane padding outside the kernel (cheap XLA slice).
    return out2d[:m, :num_labels].reshape(batch, seq, num_labels)


# -------------------------------------------------------------------------------------
# Pure-JAX reference (exact erf-GELU, f32)
# -------------------------------------------------------------------------------------
def _reference(x, w1, b1, w2, b2):
    xf = x.astype(jnp.float32)
    h = jnp.einsum("bsd,de->bse", xf, w1.astype(jnp.float32),
                   precision=lax.Precision.HIGHEST) + b1.astype(jnp.float32)
    h = 0.5 * h * (1.0 + lax.erf(h * _INV_SQRT2))
    return jnp.einsum("bse,en->bsn", h, w2.astype(jnp.float32),
                      precision=lax.Precision.HIGHEST) + b2.astype(jnp.float32)


if __name__ == "__main__":
    key = jax.random.PRNGKey(0)

    def make_params(k, dim, num_labels, dtype=jnp.float32):
        kw1, kb1, kw2, kb2 = jax.random.split(k, 4)
        w1 = (jax.random.normal(kw1, (dim, 2 * dim), jnp.float32) / math.sqrt(dim)).astype(dtype)
        b1 = (jax.random.normal(kb1, (2 * dim,), jnp.float32) * 0.01).astype(dtype)
        w2 = (jax.random.normal(kw2, (2 * dim, num_labels), jnp.float32)
              / math.sqrt(2 * dim)).astype(dtype)
        b2 = (jax.random.normal(kb2, (num_labels,), jnp.float32) * 0.01).astype(dtype)
        return w1, b1, w2, b2

    # ---- test 1: f32, resident-weights path (module-consistent small shapes) ----------
    batch, seq, dim, num_labels = 2, 8, 32, 9
    k0, k1 = jax.random.split(key)
    x = jax.random.normal(k0, (batch, seq, dim), jnp.float32)
    w1, b1, w2, b2 = make_params(k1, dim, num_labels)
    out = jax.block_until_ready(reformer_ner_forward(x, w1, b1, w2, b2))
    ref = _reference(x, w1, b1, w2, b2)
    assert out.shape == (batch, seq, num_labels)
    assert jnp.allclose(out, ref, atol=2e-3, rtol=2e-3), "f32 resident path mismatch"

    # ---- test 2: forced hidden-axis-tiled path (dim=128 -> two 128-wide k steps) ------
    dim2 = 128
    k2, k3 = jax.random.split(k1)
    x2 = jax.random.normal(k2, (batch, seq, dim2), jnp.float32)
    w1b, b1b, w2b, b2b = make_params(k3, dim2, num_labels)
    out2 = jax.block_until_ready(
        reformer_ner_forward(x2, w1b, b1b, w2b, b2b, max_hidden_tile=128))
    ref2 = _reference(x2, w1b, b1b, w2b, b2b)
    assert out2.shape == (batch, seq, num_labels)
    assert jnp.allclose(out2, ref2, atol=2e-3, rtol=2e-3), "hidden-tiled path mismatch"

    # ---- test 3: bf16 native-dtype MXU operands (looser tolerance) --------------------
    xb = x.astype(jnp.bfloat16)
    w1c, b1c, w2c, b2c = (p.astype(jnp.bfloat16) for p in (w1, b1, w2, b2))
    out3 = jax.block_until_ready(reformer_ner_forward(xb, w1c, b1c, w2c, b2c))
    ref3 = _reference(xb, w1c, b1c, w2c, b2c)
    assert jnp.allclose(out3.astype(jnp.float32), ref3, atol=8e-2, rtol=8e-2), \
        "bf16 path mismatch"

    print("KERNEL_OK")
</pallas_src>

<mosaic_0001>
module attributes {stable_mosaic.version = 11 : i64} {
  func.func @_ner_kernel_resident(%arg0: i32, %arg1: memref<8x32xf32, #tpu.memory_space<vmem>>, %arg2: memref<32x128xf32, #tpu.memory_space<vmem>>, %arg3: memref<1x128xf32, #tpu.memory_space<vmem>>, %arg4: memref<128x128xf32, #tpu.memory_space<vmem>>, %arg5: memref<1x128xf32, #tpu.memory_space<vmem>>, %arg6: memref<8x128xf32, #tpu.memory_space<vmem>>) attributes {dimension_semantics = [#tpu.dimension_semantics<parallel>], iteration_bounds = array<i64: 2>, scalar_prefetch = 0 : i64, scratch_operands = 0 : i64, tpu.core_type = #tpu.core_type<tc>, window_params = [{transform_indices = @transform_0, window_bounds = array<i64: 8, 32>}, {pipeline_mode = #tpu.pipeline_mode<synchronous>, transform_indices = @transform_1, window_bounds = array<i64: 32, 128>}, {pipeline_mode = #tpu.pipeline_mode<synchronous>, transform_indices = @transform_2, window_bounds = array<i64: 1, 128>}, {pipeline_mode = #tpu.pipeline_mode<synchronous>, transform_indices = @transform_3, window_bounds = array<i64: 128, 128>}, {pipeline_mode = #tpu.pipeline_mode<synchronous>, transform_indices = @transform_4, window_bounds = array<i64: 1, 128>}, {transform_indices = @transform_5, window_bounds = array<i64: 8, 128>}]} {
    %c0 = arith.constant 0 : index
    %c0_0 = arith.constant 0 : index
    %0 = vector.load %arg1[%c0, %c0_0] : memref<8x32xf32, #tpu.memory_space<vmem>>, vector<8x32xf32>
    %c0_1 = arith.constant 0 : index
    %c0_2 = arith.constant 0 : index
    %1 = vector.load %arg2[%c0_1, %c0_2] : memref<32x128xf32, #tpu.memory_space<vmem>>, vector<32x128xf32>
    %cst = arith.constant dense<0.000000e+00> : vector<8x128xf32>
    %2 = tpu.matmul %0, %1, %cst {dimension_numbers = #tpu.dot_dimension_numbers<[1], [0], [0], [1], [0, 0, 1, 1], [], []>} : vector<8x32xf32>, vector<32x128xf32>, vector<8x128xf32> -> vector<8x128xf32>
    %c0_3 = arith.constant 0 : index
    %c0_4 = arith.constant 0 : index
    %3 = vector.load %arg3[%c0_3, %c0_4] : memref<1x128xf32, #tpu.memory_space<vmem>>, vector<1x128xf32>
    %4 = vector.broadcast %3 : vector<1x128xf32> to vector<8x128xf32>
    %5 = arith.addf %2, %4 : vector<8x128xf32>
    %cst_5 = arith.constant 5.000000e-01 : f32
    %6 = vector.broadcast %cst_5 : f32 to vector<8x128xf32>
    %7 = arith.mulf %6, %5 : vector<8x128xf32>
    %cst_6 = arith.constant 0.707106769 : f32
    %8 = vector.broadcast %cst_6 : f32 to vector<8x128xf32>
    %9 = arith.mulf %5, %8 : vector<8x128xf32>
    %10 = math.erf %9 : vector<8x128xf32>
    %cst_7 = arith.constant 1.000000e+00 : f32
    %11 = vector.broadcast %cst_7 : f32 to vector<8x128xf32>
    %12 = arith.addf %11, %10 : vector<8x128xf32>
    %13 = arith.mulf %7, %12 : vector<8x128xf32>
    %c0_8 = arith.constant 0 : index
    %c0_9 = arith.constant 0 : index
    %14 = vector.load %arg4[%c0_8, %c0_9] : memref<128x128xf32, #tpu.memory_space<vmem>>, vector<128x128xf32>
    %cst_10 = arith.constant dense<0.000000e+00> : vector<8x128xf32>
    %15 = tpu.matmul %13, %14, %cst_10 {dimension_numbers = #tpu.dot_dimension_numbers<[1], [0], [0], [1], [0, 0, 1, 1], [], []>} : vector<8x128xf32>, vector<128x128xf32>, vector<8x128xf32> -> vector<8x128xf32>
    %c0_11 = arith.constant 0 : index
    %c0_12 = arith.constant 0 : index
    %16 = vector.load %arg5[%c0_11, %c0_12] : memref<1x128xf32, #tpu.memory_space<vmem>>, vector<1x128xf32>
    %17 = vector.broadcast %16 : vector<1x128xf32> to vector<8x128xf32>
    %18 = arith.addf %15, %17 : vector<8x128xf32>
    %c0_13 = arith.constant 0 : index
    %c0_14 = arith.constant 0 : index
    %19 = vector.load %arg6[%c0_13, %c0_14] : memref<8x128xf32, #tpu.memory_space<vmem>>, vector<8x128xf32>
    tpu.vector_store %arg6[%c0_13, %c0_14], %18 {strides = array<i32>} : memref<8x128xf32, #tpu.memory_space<vmem>>, vector<8x128xf32>,
    return
  }
  func.func @transform_0(%arg0: i32) -> (i32, i32) {
    %c0_i32 = arith.constant 0 : i32
    %c0_i32_0 = arith.constant 0 : i32
    return %arg0, %c0_i32 : i32, i32
  }
  func.func @transform_1(%arg0: i32) -> (i32, i32) {
    %c0_i32 = arith.constant 0 : i32
    %c0_i32_0 = arith.constant 0 : i32
    %c0_i32_1 = arith.constant 0 : i32
    return %c0_i32, %c0_i32_0 : i32, i32
  }
  func.func @transform_2(%arg0: i32) -> (i32, i32) {
    %c0_i32 = arith.constant 0 : i32
    %c0_i32_0 = arith.constant 0 : i32
    %c0_i32_1 = arith.constant 0 : i32
    return %c0_i32, %c0_i32_0 : i32, i32
  }
  func.func @transform_3(%arg0: i32) -> (i32, i32) {
    %c0_i32 = arith.constant 0 : i32
    %c0_i32_0 = arith.constant 0 : i32
    %c0_i32_1 = arith.constant 0 : i32
    return %c0_i32, %c0_i32_0 : i32, i32
  }
  func.func @transform_4(%arg0: i32) -> (i32, i32) {
    %c0_i32 = arith.constant 0 : i32
    %c0_i32_0 = arith.constant 0 : i32
    %c0_i32_1 = arith.constant 0 : i32
    return %c0_i32, %c0_i32_0 : i32, i32
  }
  func.func @transform_5(%arg0: i32) -> (i32, i32) {
    %c0_i32 = arith.constant 0 : i32
    %c0_i32_0 = arith.constant 0 : i32
    return %arg0, %c0_i32 : i32, i32
  }
}

</mosaic_0001>

<bundles_post_ra>
// kernel: reformer_ner_forward.1
= control target key start
LH: loop header
LB: loop body
LE: loop exit
PB: predicated region body
PF: predicated region fallthrough
CT: control target
= control target key end

     0   :  { %s622_s18 = smov 0   ;;  %s712_s0 = inlined_call_operand.vmem [shape: f32[16,32], index: 0, kind: input, shape index: {}]   ;;  %s713_s1 = inlined_call_operand.vmem [shape: f32[32,128], index: 1, kind: input, shape index: {}]   ;;  %s714_s2 = inlined_call_operand.vmem [shape: f32[1,128], index: 2, kind: input, shape index: {}]   ;;  %s715_s3 = inlined_call_operand.vmem [shape: f32[128,128], index: 3, kind: input, shape index: {}]   ;;  %s716_s4 = inlined_call_operand.vmem [shape: f32[1,128], index: 4, kind: input, shape index: {}]   ;;  %s717_s5 = inlined_call_operand.vmem [shape: f32[16,128], index: 5, kind: output, shape index: {}]  }
   0x1 LB: > { %s458_s19 = sadd.s32 4294967295, %s587_s18   ;;  %p462_p0 = scmp.ge.s32.totalorder %s587_s18, 1  ;;  %s587_s18 = sphi %s622_s18, %s15_s18  }
   0x2   : > { %p186_p1 = scmp.lt.s32.totalorder %s587_s18, 3 }
   0x4   : > { %p187_p2 = pnand %p462_p0, %p186_p1 }
   0x5   : > { %v221_v0 = vld [vmem:[%s713_s1] sm:$0xff] (!%p187_p2)  ;;  %v222_v1 = vld [vmem:[%s713_s1 + $0x8] sm:$0xff] (!%p187_p2)  ;;  %v223_v2 = vld [vmem:[%s713_s1 + $0x10] sm:$0xff] (!%p187_p2)  ;;  %v589_v3 = vmov (!%p187_p2), 0.0|0.0   ;;  %vm590_vm0 = vmmov (!%p187_p2), 0   ;;  %v591_v6 = vmov (!%p187_p2), 0.0  }
   0x6   : > { %190 = sbr.rel (%p187_p2) target bundleno = 463 (0x1cf), region = 40  ;;  %538 = vmatprep.subr.bf16.mxu0 (!%p187_p2), %v589_v3  ;;  %v539_v4 = vpack.c.bf16 (!%p187_p2), %v222_v1, %v221_v0  ;;  %v224_v5 = vld [vmem:[%s713_s1 + $0x18] sm:$0xff] (!%p187_p2)  ;;  %500 = vmatprep.mubr.msk.f32.mxu0 (!%p187_p2), %vm590_vm0, %v591_v6  ;;  %p212_p3 = scmp.lt.s32.totalorder (!%p187_p2), %s458_s19, 1  ;;  %v311_v7 = vld [vmem:[%s715_s3] sm:$0xff] (!%p187_p2)  ;;  %v312_v8 = vld [vmem:[%s715_s3 + $0x8] sm:$0xff] (!%p187_p2)  ;;  %vm232_vm1 = vcmask (!%p187_p2), 261120  }
   0x7   : > { %544 = vmatprep.subr.bf16.mxu1 (!%p187_p2), %v589_v3  ;;  %v545_v9 = vpack.c.bf16 (!%p187_p2), %v312_v8, %v311_v7  ;;  %v313_v10 = vld [vmem:[%s715_s3 + $0x10] sm:$0xff] (!%p187_p2)  ;;  %v314_v11 = vld [vmem:[%s715_s3 + $0x18] sm:$0xff] (!%p187_p2)  ;;  %535 = vmatprep.mubr.msk.f32.mxu1 (!%p187_p2), %vm590_vm0, %v591_v6  ;;  %v542_v12 = vpack.c.bf16 (!%p187_p2), %v224_v5, %v223_v2  ;;  %v315_v14 = vld [vmem:[%s715_s3 + $0x20] sm:$0xff] (!%p187_p2) }
   0x8   : > { %540 = vmatpush3.bf16.msra.mxu0 (!%p187_p2), %v539_v4  ;;  %v548_v13 = vpack.c.bf16 (!%p187_p2), %v314_v11, %v313_v10  ;;  %v316_v15 = vld [vmem:[%s715_s3 + $0x28] sm:$0xff] (!%p187_p2)  ;;  %v317_v18 = vld [vmem:[%s715_s3 + $0x30] sm:$0xff] (!%p187_p2)  ;;  %v318_v19 = vld [vmem:[%s715_s3 + $0x38] sm:$0xff] (!%p187_p2) }
   0x9   : > { %541 = vmatprep.subr.bf16.mxu0 (!%p187_p2), %v589_v3  ;;  %546 = vmatpush3.bf16.msra.mxu1 (!%p187_p2), %v545_v9  ;;  %v551_v17 = vpack.c.bf16 (!%p187_p2), %v316_v15, %v315_v14  ;;  %v554_v20 = vpack.c.bf16 (!%p187_p2), %v318_v19, %v317_v18  ;;  %v319_v21 = vld [vmem:[%s715_s3 + $0x40] sm:$0xff] (!%p187_p2)  ;;  %v320_v22 = vld [vmem:[%s715_s3 + $0x48] sm:$0xff] (!%p187_p2)  ;;  %v321_v24 = vld [vmem:[%s715_s3 + $0x50] sm:$0xff] (!%p187_p2) }
   0xa   : > { %547 = vmatprep.subr.bf16.mxu1 (!%p187_p2), %v589_v3  ;;  %v557_v23 = vpack.c.bf16 (!%p187_p2), %v320_v22, %v319_v21  ;;  %v322_v25 = vld [vmem:[%s715_s3 + $0x58] sm:$0xff] (!%p187_p2)  ;;  %v323_v27 = vld [vmem:[%s715_s3 + $0x60] sm:$0xff] (!%p187_p2)  ;;  %v324_v28 = vld [vmem:[%s715_s3 + $0x68] sm:$0xff] (!%p187_p2) }
   0xb   : > { %v560_v26 = vpack.c.bf16 (!%p187_p2), %v322_v25, %v321_v24  ;;  %v563_v29 = vpack.c.bf16 (!%p187_p2), %v324_v28, %v323_v27  ;;  %v325_v30 = vld [vmem:[%s715_s3 + $0x70] sm:$0xff] (!%p187_p2)  ;;  %v326_v31 = vld [vmem:[%s715_s3 + $0x78] sm:$0xff] (!%p187_p2)  ;;  %v465_v33 = vld [vmem:[%s714_s2] ss:$0 sm:$0xff] (!%p187_p2) }
   0xc   : > { %543 = vmatpush3.bf16.msra.mxu0 (!%p187_p2), %v542_v12  ;;  %v566_v32 = vpack.c.bf16 (!%p187_p2), %v326_v31, %v325_v30  ;;  %v467_v42 = vld [vmem:[%s716_s4] ss:$0 sm:$0xff] (!%p187_p2) }
   0xd   : > { %s719_s19 = smov (!%p212_p3, %s458_s19), 1  ;;  %549 = vmatpush3.bf16.msra.mxu1 %v548_v13 }
   0xe   : > { %s463_s11 = sshll.u32 %s719_s19, 3  ;;  %550 = vmatprep.subr.bf16.mxu1 %v589_v3 }
   0xf   : > { %s215_s20 = scalar_lea.vmem %s712_s0, %s463_s11  ;;  %s219_s25 = scalar_lea.vmem %s717_s5, %s463_s11 }
  0x10   : > { %v220_v16 = vld [vmem:[%s215_s20] sm:$0xff] }
  0x11   : > { %501 = vmatmul.mubr.msk.f32.vlgmr.msra.gmra.mrb[0].mxu0 %vm232_vm1, %v220_v16  ;;  %552 = vmatpush3.bf16.msra.mxu1 %v551_v17 }
  0x12   : > { %553 = vmatprep.subr.bf16.mxu1 %v589_v3 }
  0x15   : > { %555 = vmatpush3.bf16.msra.mxu1 %v554_v20 }
  0x16   : > { %556 = vmatprep.subr.bf16.mxu1 %v589_v3 }
  0x19   : > { %558 = vmatpush3.bf16.msra.mxu1 %v557_v23 }
  0x1a   : > { %559 = vmatprep.subr.bf16.mxu1 %v589_v3 }
  0x1d   : > { %561 = vmatpush3.bf16.msra.mxu1 %v560_v26 }
  0x1e   : > { %562 = vmatprep.subr.bf16.mxu1 %v589_v3 }
  0x21   : > { %564 = vmatpush3.bf16.msra.mxu1 %v563_v29 }
  0x22   : > { %565 = vmatprep.subr.bf16.mxu1 %v589_v3 }
  0x25   : > { %567 = vmatpush3.bf16.msra.mxu1 %v566_v32 }
  0xe4   : > { %v302_v34 = vpop.f32.mrb[0].mxu0 }
  0xe5   : > { %v303_v35 = vadd.f32 %v465_v33, %v302_v34  ;;  %v502_v36 = vpop.f32.mrb[1].mxu0 }
  0xe7   : > { %v307_v37 = vmul.f32 0.70710677, %v303_v35  ;;  %v306_v39 = vmul.f32 0.5, %v303_v35 }
  0xe9   : > { %579 = verf.f32 %v307_v37 }
  0xf3   : > { %v580_v38 = vpop.eup %579 }
  0xf4   : > { %v309_v40 = vadd.f32 1.0, %v580_v38 }
  0xf6   : > { %v310_v41 = vmul.f32 %v309_v40, %v306_v39 }
  0xf8   : > { %536 = vmatmul.mubr.f32.vlgmr.msra.gmra.mrb[0].mxu1 %v310_v41 }
 0x1cb   : > { %v400_v43 = vpop.f32.mrb[0].mxu1 }
 0x1cc   : > { %v401_v44 = vadd.f32 %v467_v42, %v400_v43  ;;  %v537_v45 = vpop.f32.mrb[1].mxu1 }
 0x1ce   : > { %404 = vst [vmem:[%s219_s25] sm:$0xff] %v401_v44 }
 0x1cf PF: > { %s15_s18 = sadd.s32 1, %s587_s18  }
 0x1d0   : > { %p12_p4 = scmp.ge.s32.totalorder %s15_s18, 4  }
 0x1d2   :  { %14 = sbr.rel (!%p12_p4) target bundleno = 1 (0x1), region = 70 }

</bundles_post_ra>
